<compile_context>
chip_gen: v5e
topology: v5e:2x2
jax: 0.10.0
libtpu: 0.0.40
codegen_flags: <defaults>
</compile_context>

<pallas_src>
import functools

import jax
import jax.numpy as jnp
from jax.experimental import pallas as pl
from jax.experimental.pallas import tpu as pltpu

LANE = 128


def _round_up(v, m):
    return ((v + m - 1) // m) * m


def _pad2d(a, rows, cols):
    return jnp.pad(a, ((0, rows - a.shape[0]), (0, cols - a.shape[1])))


# ---------------------------------------------------------------------------
# Fused kernel body: one grid step = one layer x one row tile of L_hat.
# ---------------------------------------------------------------------------
def _cheb_encoder_kernel(
        l_ref,          # (tm, Np)  bf16  row tile of L_hat (streamed)
        x_ref,          # (Np, C)   bf16  padded input features (resident)
        w_ref,          # (2, C, C) bf16  this layer's [W0, W1]
        b_ref,          # (1, C)    f32   bias
        g_ref,          # (1, C)    f32   BN gamma
        bt_ref,         # (1, C)    f32   BN beta
        o_ref,          # (tm, C)   f32   output row tile
        h_ref,          # (Np, C)   bf16  scratch: current layer input
        y_ref,          # (Np, C)   f32   scratch: current layer pre-BN output
        sum_ref,        # (1, C)    f32   scratch: BN sum
        sq_ref,         # (1, C)    f32   scratch: BN sum of squares
        *, n_true: int, tm: int, eps: float, neg_slope: float):
    layer = pl.program_id(0)
    tile = pl.program_id(1)
    n_tiles = pl.num_programs(1)
    n_pad, _ = h_ref.shape

    # Seed the first layer's input once.
    @pl.when((layer == 0) & (tile == 0))
    def _():
        h_ref[...] = x_ref[...]

    # Reset BN cross-tile accumulators at the start of every layer.
    @pl.when(tile == 0)
    def _():
        sum_ref[...] = jnp.zeros_like(sum_ref)
        sq_ref[...] = jnp.zeros_like(sq_ref)

    # ---- ChebConv(K=2) on this row tile -----------------------------------
    row0 = pl.multiple_of(tile * tm, tm)
    h_full = h_ref[...]                                   # (Np, C) bf16
    h_tile = h_ref[pl.ds(row0, tm), :]                    # (tm, C) bf16
    # T1 = L_hat[rows] @ T0   (bf16 MXU, f32 accumulation)
    t1 = jnp.dot(l_ref[...], h_full, preferred_element_type=jnp.float32)
    # out = T0 @ W0 + T1 @ W1 + bias   (two K=128 dots, no (Np, 2C) concat)
    y = (jnp.dot(h_tile, w_ref[0], preferred_element_type=jnp.float32)
         + jnp.dot(t1.astype(jnp.bfloat16), w_ref[1],
                   preferred_element_type=jnp.float32)
         + b_ref[...])                                    # (tm, C) f32

    # ---- Layers 0/1: stash pre-BN activations + accumulate BN statistics --
    @pl.when(layer < 2)
    def _():
        rid = row0 + jax.lax.broadcasted_iota(jnp.int32, (tm, 1), 0)
        vmask = (rid < n_true).astype(jnp.float32)        # exclude padded rows
        ym = y * vmask
        sum_ref[...] += jnp.sum(ym, axis=0, keepdims=True)
        sq_ref[...] += jnp.sum(y * ym, axis=0, keepdims=True)
        y_ref[pl.ds(row0, tm), :] = y

    # ---- Last layer: row tile goes straight to the output ------------------
    @pl.when(layer == 2)
    def _():
        o_ref[...] = y

    # ---- End of a BN layer: finalize stats, apply BN + LeakyReLU -----------
    @pl.when((layer < 2) & (tile == n_tiles - 1))
    def _():
        inv_n = 1.0 / float(n_true)
        mean = sum_ref[...] * inv_n                        # (1, C)
        var = jnp.maximum(sq_ref[...] * inv_n - mean * mean, 0.0)
        inv_std = jax.lax.rsqrt(var + eps)
        z = (y_ref[...] - mean) * inv_std * g_ref[...] + bt_ref[...]
        z = jnp.maximum(z, neg_slope * z)                  # LeakyReLU
        rid = jax.lax.broadcasted_iota(jnp.int32, (n_pad, 1), 0)
        vfull = (rid < n_true).astype(jnp.float32)
        h_ref[...] = (z * vfull).astype(jnp.bfloat16)      # next layer input


# ---------------------------------------------------------------------------
# VMEM budgeting / tiling helpers
# ---------------------------------------------------------------------------
def _vmem_capacity_bytes():
    try:
        cap = getattr(pltpu.get_tpu_info(), "vmem_capacity_bytes", None)
        if cap:
            return int(cap)
    except Exception:
        pass
    return 64 << 20        # conservative fallback (v7x-sized)


def _pick_tm(n_pad):
    # Largest row tile (multiple of 128, <= 512) dividing n_pad while keeping
    # the double-buffered bf16 L row tile under ~16 MiB.
    for cand in (512, 256, 128):
        if n_pad % cand == 0 and 4 * cand * n_pad <= (16 << 20):
            return cand
    return 128


def _vmem_limit_bytes(n_pad, c_pad, tm):
    need = 0
    need += 2 * tm * n_pad * 2            # L row tile, double-buffered, bf16
    need += 2 * n_pad * c_pad * 2         # x (resident + pipeline buffer)
    need += 2 * 2 * c_pad * c_pad * 2     # per-layer weight stack, bf16
    need += 2 * 3 * c_pad * 4             # bias / gamma / beta
    need += 2 * tm * c_pad * 4            # output row tile, f32
    need += n_pad * c_pad * (2 + 4)       # h (bf16) + y (f32) scratch
    need += 2 * c_pad * 4                 # BN accumulators
    need += 6 * tm * c_pad * 4            # in-flight f32 intermediates
    need = int(1.25 * need) + (2 << 20)
    cap = (_vmem_capacity_bytes() * 7) // 8   # ~56 MiB v7x, ~112 MiB v5e/v6e
    return max(min(need, cap), 16 << 20)


# ---------------------------------------------------------------------------
# Forward pass.  Only the small (N, Cin) feature matrix is padded per call;
# L_hat and all parameters are prepared once at setup (hoisted per review).
# ---------------------------------------------------------------------------
@jax.jit
def cheb_encoder_forward(x, l_bf, packed):
    n, c_in = x.shape
    n_pad = l_bf.shape[0]
    c_pad = packed["w"].shape[-1]

    x_bf = jnp.pad(x, ((0, n_pad - n), (0, c_pad - c_in))).astype(jnp.bfloat16)

    tm = _pick_tm(n_pad)
    n_tiles = n_pad // tm

    kernel = functools.partial(_cheb_encoder_kernel, n_true=n, tm=tm,
                               eps=1e-5, neg_slope=0.01)

    grid_spec = pltpu.PrefetchScalarGridSpec(
        num_scalar_prefetch=0,
        grid=(3, n_tiles),
        in_specs=[
            pl.BlockSpec((tm, n_pad), lambda l, t: (t, 0)),           # L rows
            pl.BlockSpec((n_pad, c_pad), lambda l, t: (0, 0)),        # x
            pl.BlockSpec((None, 2, c_pad, c_pad),
                         lambda l, t: (l, 0, 0, 0)),                  # [W0;W1]
            pl.BlockSpec((None, 1, c_pad), lambda l, t: (l, 0, 0)),   # bias
            pl.BlockSpec((None, 1, c_pad), lambda l, t: (l, 0, 0)),   # gamma
            pl.BlockSpec((None, 1, c_pad), lambda l, t: (l, 0, 0)),   # beta
        ],
        out_specs=pl.BlockSpec((tm, c_pad), lambda l, t: (t, 0)),
        scratch_shapes=[
            pltpu.VMEM((n_pad, c_pad), jnp.bfloat16),   # h: layer input
            pltpu.VMEM((n_pad, c_pad), jnp.float32),    # y: pre-BN output
            pltpu.VMEM((1, c_pad), jnp.float32),        # BN sum
            pltpu.VMEM((1, c_pad), jnp.float32),        # BN sum of squares
        ],
    )

    out = pl.pallas_call(
        kernel,
        out_shape=jax.ShapeDtypeStruct((n_pad, c_pad), jnp.float32),
        grid_spec=grid_spec,
        compiler_params=pltpu.CompilerParams(
            dimension_semantics=("arbitrary", "arbitrary"),
            vmem_limit_bytes=_vmem_limit_bytes(n_pad, c_pad, tm),
        ),
    )(l_bf, x_bf, packed["w"], packed["b"], packed["g"], packed["bt"])

    return out[:n, :c_in]


# ---------------------------------------------------------------------------
# One-time setup (hoisted out of the forward path).
# ---------------------------------------------------------------------------
def build_scaled_laplacian_padded(edge_index, num_nodes, n_pad):
    """Dense L_hat = -D^-1/2 A D^-1/2 (ChebConv sym norm, lambda_max=2.0),
    built directly at its padded shape and cast to bf16 once."""
    src, dst = edge_index[0], edge_index[1]
    a = jnp.zeros((n_pad, n_pad), jnp.float32).at[dst, src].add(1.0)
    deg = jnp.zeros((n_pad,), jnp.float32).at[src].add(1.0)
    dinv = jnp.where(deg > 0, 1.0 / jnp.sqrt(jnp.maximum(deg, 1e-12)), 0.0)
    return (-(dinv[:, None] * a * dinv[None, :])).astype(jnp.bfloat16)


def prepare_params(params, c_pad):
    """Pad + stack all layer parameters ONCE (not in the per-call path)."""
    w, b, g, bt = [], [], [], []
    for p in params:
        w.append(jnp.stack([_pad2d(p["w0"], c_pad, c_pad),
                            _pad2d(p["w1"], c_pad, c_pad)], axis=0))
        b.append(_pad2d(p["b"], 1, c_pad))
        g.append(_pad2d(p["gamma"], 1, c_pad))
        bt.append(_pad2d(p["beta"], 1, c_pad))
    return {
        "w": jnp.stack(w, axis=0).astype(jnp.bfloat16),   # (3, 2, C, C)
        "b": jnp.stack(b, axis=0),                        # (3, 1, C) f32
        "g": jnp.stack(g, axis=0),                        # (3, 1, C) f32
        "bt": jnp.stack(bt, axis=0),                      # (3, 1, C) f32
    }


# ---------------------------------------------------------------------------
# Parameter init (deterministic, glorot-like for ChebConv weights)
# ---------------------------------------------------------------------------
def glorot(key, shape):
    fan_in, fan_out = shape
    limit = jnp.sqrt(6.0 / (fan_in + fan_out))
    return jax.random.uniform(key, shape, jnp.float32, -limit, limit)


def init_params(key, in_channels, hidden_channels):
    h2 = hidden_channels // 2
    dims = [(in_channels, hidden_channels),
            (hidden_channels, h2),
            (h2, in_channels)]
    params = []
    for (cin, cout) in dims:
        key, k0, k1 = jax.random.split(key, 3)
        params.append({
            "w0": glorot(k0, (cin, cout)),
            "w1": glorot(k1, (cin, cout)),
            "b": jnp.zeros((1, cout), jnp.float32),       # ChebConv bias: zeros
            "gamma": jnp.ones((1, cout), jnp.float32),    # BN weight
            "beta": jnp.zeros((1, cout), jnp.float32),    # BN bias
        })
    return params


if __name__ == "__main__":
    key = jax.random.PRNGKey(0)

    num_nodes = 16
    in_channels = 4
    hidden_channels = 32

    key, kx, ke, kp = jax.random.split(key, 4)

    # Node features (N, Cin)
    x = jax.random.normal(kx, (num_nodes, in_channels), jnp.float32)

    # Random undirected edge set (symmetrized)
    num_edges = 24
    src = jax.random.randint(ke, (num_edges,), 0, num_nodes)
    dst = jax.random.randint(jax.random.fold_in(ke, 1), (num_edges,), 0, num_nodes)
    edge_index = jnp.stack([jnp.concatenate([src, dst]),
                            jnp.concatenate([dst, src])], axis=0).astype(jnp.int32)

    n_pad = _round_up(num_nodes, LANE)
    c_pad = _round_up(max(in_channels, hidden_channels, hidden_channels // 2),
                      LANE)

    # One-time setup (hoisted): padded bf16 Laplacian + packed padded params.
    l_bf = build_scaled_laplacian_padded(edge_index, num_nodes, n_pad)
    params = init_params(kp, in_channels, hidden_channels)
    packed = prepare_params(params, c_pad)

    out = cheb_encoder_forward(x, l_bf, packed)
    jax.block_until_ready(out)
    assert out.shape == (num_nodes, in_channels), out.shape
    print("KERNEL_OK")
</pallas_src>

<mosaic_0001>
module attributes {stable_mosaic.version = 11 : i64} {
  func.func @_cheb_encoder_kernel(%arg0: i32, %arg1: i32, %arg2: memref<128x128xbf16, #tpu.memory_space<vmem>>, %arg3: memref<128x128xbf16, #tpu.memory_space<vmem>>, %arg4: memref<1x2x128x128xbf16, #tpu.memory_space<vmem>>, %arg5: memref<1x1x128xf32, #tpu.memory_space<vmem>>, %arg6: memref<1x1x128xf32, #tpu.memory_space<vmem>>, %arg7: memref<1x1x128xf32, #tpu.memory_space<vmem>>, %arg8: memref<128x128xf32, #tpu.memory_space<vmem>>, %arg9: memref<128x128xbf16, #tpu.memory_space<vmem>>, %arg10: memref<128x128xf32, #tpu.memory_space<vmem>>, %arg11: memref<1x128xf32, #tpu.memory_space<vmem>>, %arg12: memref<1x128xf32, #tpu.memory_space<vmem>>) attributes {dimension_semantics = [#tpu.dimension_semantics<arbitrary>, #tpu.dimension_semantics<arbitrary>], iteration_bounds = array<i64: 3, 1>, scalar_prefetch = 0 : i64, scratch_operands = 4 : i64, tpu.core_type = #tpu.core_type<tc>, window_params = [{transform_indices = @transform_0, window_bounds = array<i64: 128, 128>}, {pipeline_mode = #tpu.pipeline_mode<synchronous>, transform_indices = @transform_1, window_bounds = array<i64: 128, 128>}, {transform_indices = @transform_2, window_bounds = array<i64: 1, 2, 128, 128>}, {transform_indices = @transform_3, window_bounds = array<i64: 1, 1, 128>}, {transform_indices = @transform_4, window_bounds = array<i64: 1, 1, 128>}, {transform_indices = @transform_5, window_bounds = array<i64: 1, 1, 128>}, {transform_indices = @transform_6, window_bounds = array<i64: 128, 128>}]} {
    %c0_i32 = arith.constant 0 : i32
    %0 = arith.cmpi eq, %arg0, %c0_i32 : i32
    %c0_i32_0 = arith.constant 0 : i32
    %1 = arith.cmpi eq, %arg1, %c0_i32_0 : i32
    %2 = arith.andi %0, %1 : i1
    %3 = arith.extui %2 : i1 to i32
    %c0_i32_1 = arith.constant 0 : i32
    %4 = arith.cmpi ne, %3, %c0_i32_1 : i32
    scf.if %4 {
      %c0_26 = arith.constant 0 : index
      %c0_27 = arith.constant 0 : index
      %38 = vector.load %arg3[%c0_26, %c0_27] : memref<128x128xbf16, #tpu.memory_space<vmem>>, vector<128x128xbf16>
      %c0_28 = arith.constant 0 : index
      %c0_29 = arith.constant 0 : index
      %39 = vector.load %arg9[%c0_28, %c0_29] : memref<128x128xbf16, #tpu.memory_space<vmem>>, vector<128x128xbf16>
      tpu.vector_store %arg9[%c0_28, %c0_29], %38 {strides = array<i32>} : memref<128x128xbf16, #tpu.memory_space<vmem>>, vector<128x128xbf16>,
    } else {
    }
    %c0_i32_2 = arith.constant 0 : i32
    %5 = arith.cmpi eq, %arg1, %c0_i32_2 : i32
    %6 = arith.extui %5 : i1 to i32
    %c0_i32_3 = arith.constant 0 : i32
    %7 = arith.cmpi ne, %6, %c0_i32_3 : i32
    scf.if %7 {
      %cst_26 = arith.constant 0.000000e+00 : f32
      %38 = vector.broadcast %cst_26 : f32 to vector<1x128xf32>
      %c0_27 = arith.constant 0 : index
      %c0_28 = arith.constant 0 : index
      %39 = vector.load %arg11[%c0_27, %c0_28] : memref<1x128xf32, #tpu.memory_space<vmem>>, vector<1x128xf32>
      tpu.vector_store %arg11[%c0_27, %c0_28], %38 {strides = array<i32>} : memref<1x128xf32, #tpu.memory_space<vmem>>, vector<1x128xf32>,
      %cst_29 = arith.constant 0.000000e+00 : f32
      %40 = vector.broadcast %cst_29 : f32 to vector<1x128xf32>
      %c0_30 = arith.constant 0 : index
      %c0_31 = arith.constant 0 : index
      %41 = vector.load %arg12[%c0_30, %c0_31] : memref<1x128xf32, #tpu.memory_space<vmem>>, vector<1x128xf32>
      tpu.vector_store %arg12[%c0_30, %c0_31], %40 {strides = array<i32>} : memref<1x128xf32, #tpu.memory_space<vmem>>, vector<1x128xf32>,
    } else {
    }
    %c128_i32 = arith.constant 128 : i32
    %8 = arith.muli %arg1, %c128_i32 : i32
    %9 = tpu.assume_multiple %8, 128 : i32
    %c0 = arith.constant 0 : index
    %c0_4 = arith.constant 0 : index
    %10 = vector.load %arg9[%c0, %c0_4] : memref<128x128xbf16, #tpu.memory_space<vmem>>, vector<128x128xbf16>
    %11 = arith.index_cast %9 : i32 to index
    %c0_5 = arith.constant 0 : index
    %12 = vector.load %arg9[%11, %c0_5] : memref<128x128xbf16, #tpu.memory_space<vmem>>, vector<128x128xbf16>
    %c0_6 = arith.constant 0 : index
    %c0_7 = arith.constant 0 : index
    %13 = vector.load %arg2[%c0_6, %c0_7] : memref<128x128xbf16, #tpu.memory_space<vmem>>, vector<128x128xbf16>
    %cst = arith.constant dense<0.000000e+00> : vector<128x128xf32>
    %14 = tpu.matmul %13, %10, %cst {dimension_numbers = #tpu.dot_dimension_numbers<[1], [0], [0], [1], [0, 0, 1, 1], [], []>} : vector<128x128xbf16>, vector<128x128xbf16>, vector<128x128xf32> -> vector<128x128xf32>
    %c0_8 = arith.constant 0 : index
    %c0_9 = arith.constant 0 : index
    %c0_10 = arith.constant 0 : index
    %c0_11 = arith.constant 0 : index
    %15 = vector.load %arg4[%c0_8, %c0_9, %c0_10, %c0_11] : memref<1x2x128x128xbf16, #tpu.memory_space<vmem>>, vector<1x1x128x128xbf16>
    %16 = vector.shape_cast %15 : vector<1x1x128x128xbf16> to vector<128x128xbf16>
    %cst_12 = arith.constant dense<0.000000e+00> : vector<128x128xf32>
    %17 = tpu.matmul %12, %16, %cst_12 {dimension_numbers = #tpu.dot_dimension_numbers<[1], [0], [0], [1], [0, 0, 1, 1], [], []>} : vector<128x128xbf16>, vector<128x128xbf16>, vector<128x128xf32> -> vector<128x128xf32>
    %18 = arith.truncf %14 : vector<128x128xf32> to vector<128x128xbf16>
    %c0_13 = arith.constant 0 : index
    %c1 = arith.constant 1 : index
    %c0_14 = arith.constant 0 : index
    %c0_15 = arith.constant 0 : index
    %19 = vector.load %arg4[%c0_13, %c1, %c0_14, %c0_15] : memref<1x2x128x128xbf16, #tpu.memory_space<vmem>>, vector<1x1x128x128xbf16>
    %20 = vector.shape_cast %19 : vector<1x1x128x128xbf16> to vector<128x128xbf16>
    %cst_16 = arith.constant dense<0.000000e+00> : vector<128x128xf32>
    %21 = tpu.matmul %18, %20, %cst_16 {dimension_numbers = #tpu.dot_dimension_numbers<[1], [0], [0], [1], [0, 0, 1, 1], [], []>} : vector<128x128xbf16>, vector<128x128xbf16>, vector<128x128xf32> -> vector<128x128xf32>
    %22 = arith.addf %17, %21 : vector<128x128xf32>
    %c0_17 = arith.constant 0 : index
    %c0_18 = arith.constant 0 : index
    %c0_19 = arith.constant 0 : index
    %23 = vector.load %arg5[%c0_17, %c0_18, %c0_19] : memref<1x1x128xf32, #tpu.memory_space<vmem>>, vector<1x1x128xf32>
    %24 = vector.shape_cast %23 : vector<1x1x128xf32> to vector<1x128xf32>
    %25 = vector.broadcast %24 : vector<1x128xf32> to vector<128x128xf32>
    %26 = arith.addf %22, %25 : vector<128x128xf32>
    %c2_i32 = arith.constant 2 : i32
    %27 = arith.cmpi slt, %arg0, %c2_i32 : i32
    %28 = arith.extui %27 : i1 to i32
    %c0_i32_20 = arith.constant 0 : i32
    %29 = arith.cmpi ne, %28, %c0_i32_20 : i32
    scf.if %29 {
      %38 = tpu.iota {dimensions = array<i32: 0>} : vector<128x1xi32>
      %39 = vector.broadcast %9 : i32 to vector<128x1xi32>
      %40 = arith.addi %39, %38 : vector<128x1xi32>
      %c16_i32 = arith.constant 16 : i32
      %41 = vector.broadcast %c16_i32 : i32 to vector<128x1xi32>
      %42 = arith.cmpi slt, %40, %41 : vector<128x1xi32>
      %43 = arith.extui %42 : vector<128x1xi1> to vector<128x1xi32>
      %44 = arith.sitofp %43 : vector<128x1xi32> to vector<128x1xf32>
      %45 = vector.broadcast %44 : vector<128x1xf32> to vector<128x128xf32>
      %46 = arith.mulf %26, %45 : vector<128x128xf32>
      %c0_26 = arith.constant 0 : index
      %c0_27 = arith.constant 0 : index
      %47 = vector.load %arg11[%c0_26, %c0_27] : memref<1x128xf32, #tpu.memory_space<vmem>>, vector<1x128xf32>
      %cst_28 = arith.constant dense<0.000000e+00> : vector<128xf32>
      %48 = vector.multi_reduction <add>, %46, %cst_28 [0] : vector<128x128xf32> to vector<128xf32>
      %49 = vector.shape_cast %48 : vector<128xf32> to vector<1x128xf32>
      %50 = arith.addf %47, %49 : vector<1x128xf32>
      %c0_29 = arith.constant 0 : index
      %c0_30 = arith.constant 0 : index
      %51 = vector.load %arg11[%c0_29, %c0_30] : memref<1x128xf32, #tpu.memory_space<vmem>>, vector<1x128xf32>
      tpu.vector_store %arg11[%c0_29, %c0_30], %50 {strides = array<i32>} : memref<1x128xf32, #tpu.memory_space<vmem>>, vector<1x128xf32>,
      %c0_31 = arith.constant 0 : index
      %c0_32 = arith.constant 0 : index
      %52 = vector.load %arg12[%c0_31, %c0_32] : memref<1x128xf32, #tpu.memory_space<vmem>>, vector<1x128xf32>
      %53 = arith.mulf %26, %46 : vector<128x128xf32>
      %cst_33 = arith.constant dense<0.000000e+00> : vector<128xf32>
      %54 = vector.multi_reduction <add>, %53, %cst_33 [0] : vector<128x128xf32> to vector<128xf32>
      %55 = vector.shape_cast %54 : vector<128xf32> to vector<1x128xf32>
      %56 = arith.addf %52, %55 : vector<1x128xf32>
      %c0_34 = arith.constant 0 : index
      %c0_35 = arith.constant 0 : index
      %57 = vector.load %arg12[%c0_34, %c0_35] : memref<1x128xf32, #tpu.memory_space<vmem>>, vector<1x128xf32>
      tpu.vector_store %arg12[%c0_34, %c0_35], %56 {strides = array<i32>} : memref<1x128xf32, #tpu.memory_space<vmem>>, vector<1x128xf32>,
      %58 = arith.index_cast %9 : i32 to index
      %c0_36 = arith.constant 0 : index
      %59 = vector.load %arg10[%58, %c0_36] : memref<128x128xf32, #tpu.memory_space<vmem>>, vector<128x128xf32>
      tpu.vector_store %arg10[%58, %c0_36], %26 {strides = array<i32>} : memref<128x128xf32, #tpu.memory_space<vmem>>, vector<128x128xf32>,
    } else {
    }
    %c2_i32_21 = arith.constant 2 : i32
    %30 = arith.cmpi eq, %arg0, %c2_i32_21 : i32
    %31 = arith.extui %30 : i1 to i32
    %c0_i32_22 = arith.constant 0 : i32
    %32 = arith.cmpi ne, %31, %c0_i32_22 : i32
    scf.if %32 {
      %c0_26 = arith.constant 0 : index
      %c0_27 = arith.constant 0 : index
      %38 = vector.load %arg8[%c0_26, %c0_27] : memref<128x128xf32, #tpu.memory_space<vmem>>, vector<128x128xf32>
      tpu.vector_store %arg8[%c0_26, %c0_27], %26 {strides = array<i32>} : memref<128x128xf32, #tpu.memory_space<vmem>>, vector<128x128xf32>,
    } else {
    }
    %c2_i32_23 = arith.constant 2 : i32
    %33 = arith.cmpi slt, %arg0, %c2_i32_23 : i32
    %c0_i32_24 = arith.constant 0 : i32
    %34 = arith.cmpi eq, %arg1, %c0_i32_24 : i32
    %35 = arith.andi %33, %34 : i1
    %36 = arith.extui %35 : i1 to i32
    %c0_i32_25 = arith.constant 0 : i32
    %37 = arith.cmpi ne, %36, %c0_i32_25 : i32
    scf.if %37 {
      %c0_26 = arith.constant 0 : index
      %c0_27 = arith.constant 0 : index
      %38 = vector.load %arg11[%c0_26, %c0_27] : memref<1x128xf32, #tpu.memory_space<vmem>>, vector<1x128xf32>
      %cst_28 = arith.constant 6.250000e-02 : f32
      %39 = vector.broadcast %cst_28 : f32 to vector<1x128xf32>
      %40 = arith.mulf %38, %39 : vector<1x128xf32>
      %c0_29 = arith.constant 0 : index
      %c0_30 = arith.constant 0 : index
      %41 = vector.load %arg12[%c0_29, %c0_30] : memref<1x128xf32, #tpu.memory_space<vmem>>, vector<1x128xf32>
      %cst_31 = arith.constant 6.250000e-02 : f32
      %42 = vector.broadcast %cst_31 : f32 to vector<1x128xf32>
      %43 = arith.mulf %41, %42 : vector<1x128xf32>
      %44 = arith.mulf %40, %40 : vector<1x128xf32>
      %45 = arith.subf %43, %44 : vector<1x128xf32>
      %cst_32 = arith.constant 0.000000e+00 : f32
      %46 = vector.broadcast %cst_32 : f32 to vector<1x128xf32>
      %47 = arith.maximumf %45, %46 : vector<1x128xf32>
      %cst_33 = arith.constant 9.99999974E-6 : f32
      %48 = vector.broadcast %cst_33 : f32 to vector<1x128xf32>
      %49 = arith.addf %47, %48 : vector<1x128xf32>
      %50 = math.rsqrt %49 : vector<1x128xf32>
      %c0_34 = arith.constant 0 : index
      %c0_35 = arith.constant 0 : index
      %51 = vector.load %arg10[%c0_34, %c0_35] : memref<128x128xf32, #tpu.memory_space<vmem>>, vector<128x128xf32>
      %52 = vector.broadcast %40 : vector<1x128xf32> to vector<128x128xf32>
      %53 = arith.subf %51, %52 : vector<128x128xf32>
      %54 = vector.broadcast %50 : vector<1x128xf32> to vector<128x128xf32>
      %55 = arith.mulf %53, %54 : vector<128x128xf32>
      %c0_36 = arith.constant 0 : index
      %c0_37 = arith.constant 0 : index
      %c0_38 = arith.constant 0 : index
      %56 = vector.load %arg6[%c0_36, %c0_37, %c0_38] : memref<1x1x128xf32, #tpu.memory_space<vmem>>, vector<1x1x128xf32>
      %57 = vector.shape_cast %56 : vector<1x1x128xf32> to vector<1x128xf32>
      %58 = vector.broadcast %57 : vector<1x128xf32> to vector<128x128xf32>
      %59 = arith.mulf %55, %58 : vector<128x128xf32>
      %c0_39 = arith.constant 0 : index
      %c0_40 = arith.constant 0 : index
      %c0_41 = arith.constant 0 : index
      %60 = vector.load %arg7[%c0_39, %c0_40, %c0_41] : memref<1x1x128xf32, #tpu.memory_space<vmem>>, vector<1x1x128xf32>
      %61 = vector.shape_cast %60 : vector<1x1x128xf32> to vector<1x128xf32>
      %62 = vector.broadcast %61 : vector<1x128xf32> to vector<128x128xf32>
      %63 = arith.addf %59, %62 : vector<128x128xf32>
      %cst_42 = arith.constant 0.00999999977 : f32
      %64 = vector.broadcast %cst_42 : f32 to vector<128x128xf32>
      %65 = arith.mulf %64, %63 : vector<128x128xf32>
      %66 = arith.maximumf %63, %65 : vector<128x128xf32>
      %67 = tpu.iota {dimensions = array<i32: 0>} : vector<128x1xi32>
      %c16_i32 = arith.constant 16 : i32
      %68 = vector.broadcast %c16_i32 : i32 to vector<128x1xi32>
      %69 = arith.cmpi slt, %67, %68 : vector<128x1xi32>
      %70 = arith.extui %69 : vector<128x1xi1> to vector<128x1xi32>
      %71 = arith.sitofp %70 : vector<128x1xi32> to vector<128x1xf32>
      %72 = vector.broadcast %71 : vector<128x1xf32> to vector<128x128xf32>
      %73 = arith.mulf %66, %72 : vector<128x128xf32>
      %74 = arith.truncf %73 : vector<128x128xf32> to vector<128x128xbf16>
      %c0_43 = arith.constant 0 : index
      %c0_44 = arith.constant 0 : index
      %75 = vector.load %arg9[%c0_43, %c0_44] : memref<128x128xbf16, #tpu.memory_space<vmem>>, vector<128x128xbf16>
      tpu.vector_store %arg9[%c0_43, %c0_44], %74 {strides = array<i32>} : memref<128x128xbf16, #tpu.memory_space<vmem>>, vector<128x128xbf16>,
    } else {
    }
    return
  }
  func.func @transform_0(%arg0: i32, %arg1: i32) -> (i32, i32) {
    %c0_i32 = arith.constant 0 : i32
    %c0_i32_0 = arith.constant 0 : i32
    return %arg1, %c0_i32 : i32, i32
  }
  func.func @transform_1(%arg0: i32, %arg1: i32) -> (i32, i32) {
    %c0_i32 = arith.constant 0 : i32
    %c0_i32_0 = arith.constant 0 : i32
    %c0_i32_1 = arith.constant 0 : i32
    return %c0_i32, %c0_i32_0 : i32, i32
  }
  func.func @transform_2(%arg0: i32, %arg1: i32) -> (i32, i32, i32, i32) {
    %c0_i32 = arith.constant 0 : i32
    %c0_i32_0 = arith.constant 0 : i32
    %c0_i32_1 = arith.constant 0 : i32
    %c0_i32_2 = arith.constant 0 : i32
    return %arg0, %c0_i32, %c0_i32_0, %c0_i32_1 : i32, i32, i32, i32
  }
  func.func @transform_3(%arg0: i32, %arg1: i32) -> (i32, i32, i32) {
    %c0_i32 = arith.constant 0 : i32
    %c0_i32_0 = arith.constant 0 : i32
    %c0_i32_1 = arith.constant 0 : i32
    return %arg0, %c0_i32, %c0_i32_0 : i32, i32, i32
  }
  func.func @transform_4(%arg0: i32, %arg1: i32) -> (i32, i32, i32) {
    %c0_i32 = arith.constant 0 : i32
    %c0_i32_0 = arith.constant 0 : i32
    %c0_i32_1 = arith.constant 0 : i32
    return %arg0, %c0_i32, %c0_i32_0 : i32, i32, i32
  }
  func.func @transform_5(%arg0: i32, %arg1: i32) -> (i32, i32, i32) {
    %c0_i32 = arith.constant 0 : i32
    %c0_i32_0 = arith.constant 0 : i32
    %c0_i32_1 = arith.constant 0 : i32
    return %arg0, %c0_i32, %c0_i32_0 : i32, i32, i32
  }
  func.func @transform_6(%arg0: i32, %arg1: i32) -> (i32, i32) {
    %c0_i32 = arith.constant 0 : i32
    %c0_i32_0 = arith.constant 0 : i32
    return %arg1, %c0_i32 : i32, i32
  }
}

</mosaic_0001>

<bundles_post_ra>
// kernel: cheb_encoder_forward.1
= control target key start
LH: loop header
LB: loop body
LE: loop exit
PB: predicated region body
PF: predicated region fallthrough
CT: control target
= control target key end

     0   :  { %11 = vsyncpa [#allocation7], 0  ;;  %s2409_s0 = inlined_call_operand.vmem [shape: bf16[128,128], index: 0, kind: input, shape index: {}]   ;;  %s2410_s1 = inlined_call_operand.vmem [shape: bf16[128,128], index: 1, kind: input, shape index: {}]   ;;  %s2411_s2 = inlined_call_operand.hbm [shape: bf16[3,2,128,128], index: 2, kind: input, shape index: {}]   ;;  %s2412_s3 = inlined_call_operand.vmem [shape: f32[3,1,128], index: 3, kind: input, shape index: {}]   ;;  %s2413_s4 = inlined_call_operand.vmem [shape: f32[3,1,128], index: 4, kind: input, shape index: {}]   ;;  %s2414_s5 = inlined_call_operand.vmem [shape: f32[3,1,128], index: 5, kind: input, shape index: {}]   ;;  %s2415_s6 = inlined_call_operand.vmem [shape: f32[128,128], index: 6, kind: output, shape index: {}]  }
   0x1   :  { %13 = vsyncpa [#allocation7 + $0x1], 0  ;;  %s1968_s21 = smov 0   ;;  %s1970_s22 = smov 0  }
   0x2   :  { %s1972_s23 = smov 0   ;;  %s1974_s24 = smov 0  }
   0x3   :  { %s1976_s25 = smov 0   ;;  %s1978_s26 = smov 0  }
   0x4 LB: > { %s1478_s27 = sadd.s32 4294967295, %s1928_s26   ;;  %s31_s28 = sadd.s32 1, %s1924_s25  ;;  %s1928_s26 = sphi %s1978_s26, %s19_s26   ;;  %s1924_s25 = sphi %s1976_s25, %s2424_s25   ;;  %s1920_s24 = sphi %s1974_s24, %s2423_s24   ;;  %s1916_s23 = sphi %s1972_s23, %s2422_s23   ;;  %s1912_s22 = sphi %s1970_s22, %s2421_s22   ;;  %s1908_s21 = sphi %s1968_s21, %s2420_s21  }
   0x5   : > { %p33_p0 = scmp.ge.s32.totalorder %s31_s28, 3  ;;  %s85_s29 = sadd.s32 1, %s1916_s23 }
   0x6   : > { %p92_p1 = scmp.ne.s32.totalorder %s1916_s23, %s1912_s22  ;;  %p93_p2 = scmp.eq.s32.totalorder %s1928_s26, 0 }
   0x7   : > { %s2426_s28 = smov (%p33_p0, %s31_s28), 0  ;;  %p98_p4 = scmp.ne.s32.totalorder %s1912_s22, %s1908_s21 }
   0x8   : > { %p2004_p3 = por %p93_p2, %p92_p1  ;;  %s82_s7 = ssub.s32 %s1924_s25, %s2426_s28 }
   0x9   : > { %p99_p5 = scmp.eq.s32.totalorder %s1478_s27, 0  ;;  %p83_p6 = scmp.eq.s32.totalorder %s82_s7, 0 }
   0xa   : > { %p1791_p8 = scmp.lt.s32.totalorder %s1928_s26, 3  ;;  %s238_s10 = sand.u32 1, %s1916_s23  }
   0xb   : > { %p2011_p7 = por %p99_p5, %p98_p4  ;;  %s1671_s11 = sshll.u32 %s1924_s25, 7 }
   0xc   : > { %s2017_s9 = scalar_select %p83_p6, %s1916_s23, %s85_s29  }
   0xd   : > { %s1482_s12 = sshll.u32 %s238_s10, 7  ;;  %s247_s15 = scalar_lea.hbm %s2411_s2, %s1671_s11 }
   0xe   : > { %s248_s16 = sshll.u32 %s247_s15, 4  ;;  %s242_s17 = scalar_lea.vmem [#allocation6], %s1482_s12  ;;  %s249_s16 = int_to_ptr.hbm [resolvable:$true] %s248_s16 }
   0xf   : > { %s250_s18 = sshll.u32 %s242_s17, 4  ;;  %p1788_p9 = pnand %p1791_p8, %p2004_p3  ;;  %s251_s18 = int_to_ptr.vmem [resolvable:$true] %s250_s18 }
  0x10   : > { %p1485_p10 = scmp.ge.s32.totalorder %s1928_s26, 1  ;;  %p276_p11 = scmp.lt.s32.totalorder %s1928_s26, 4 }
  0x11   : > { %s239_s19 = scalar_lea.sflag [#allocation7], %s238_s10  ;;  %s1930_s20 = smov 64  }
  0x12   : > { %s1931_s21 = smov 4   ;;  %p277_p12 = pnand %p1485_p10, %p276_p11 }
  0x13   : > { %1790 = dma.hbm_to_vmem [thread:$0]  (!%p1788_p9), %s249_s16, 2048, %s251_s18, %s239_s19, %s1930_s20, %s1930_s20, %s1931_s21  }
  0x14   : > { %280 = sbr.rel (%p277_p12) target bundleno = 561 (0x231), region = 44  ;;  %s282_s27 = sand.u32 (!%p277_p12), 1, %s1912_s22  }
  0x15   : > { %s1486_s29 = sshll.u32 (!%p277_p12), %s282_s27, 7  ;;  %s283_s7 = scalar_lea.sflag (!%p277_p12), [#allocation7], %s282_s27 }
  0x16   : > { %s2029_s11 = scalar_lea.vmem (!%p277_p12), [#allocation6], %s1486_s29 }
  0x19   : > { %1903 = dma.done.wait (%p2011_p7), %s283_s7, 2048  }
  0x1a   : > { %1905 = vsyncadd (%p2011_p7), %s283_s7, 4294965248  ;;  %p336_p13 = scmp.lt.s32.totalorder %s1920_s24, 2  ;;  %p351_p0 = scmp.eq.s32.totalorder %s1920_s24, 0 }
  0x1b   : > { %v357_v0 = vld [vmem:[%s2410_s1] sm:$0xff] (%p351_p0)   ;;  %v359_v1 = vld [vmem:[%s2410_s1 + $0x8] sm:$0xff] (%p351_p0)   ;;  %v361_v2 = vld [vmem:[%s2410_s1 + $0x10] sm:$0xff] (%p351_p0)  }
  0x1c   : > { %s2040_s30 = scalar_select %p336_p13, %s1920_s24, 2  ;;  %373 = vst [vmem:[#allocation2] sm:$0xff] (%p351_p0), %v357_v0   ;;  %v363_v3 = vld [vmem:[%s2410_s1 + $0x18] sm:$0xff] (%p351_p0)   ;;  %v365_v4 = vld [vmem:[%s2410_s1 + $0x20] sm:$0xff] (%p351_p0)   ;;  %v367_v5 = vld [vmem:[%s2410_s1 + $0x28] sm:$0xff] (%p351_p0)  }
  0x1d   : > { %356 = sbr.rel (!%p351_p0) target bundleno = 36 (0x24), region = 52  ;;  %375 = vst [vmem:[#allocation2 + $0x8] sm:$0xff] (%p351_p0), %v359_v1   ;;  %v369_v6 = vld [vmem:[%s2410_s1 + $0x30] sm:$0xff] (%p351_p0)   ;;  %v371_v7 = vld [vmem:[%s2410_s1 + $0x38] sm:$0xff] (%p351_p0)  }
  0x1e   : > { %s338_s13 = scalar_lea.vmem %s2412_s3, %s2040_s30  ;;  %s341_s8 = scalar_lea.vmem %s2413_s4, %s2040_s30  ;;  %377 = vst [vmem:[#allocation2 + $0x10] sm:$0xff] (%p351_p0), %v361_v2  }
  0x1f   : > { %s344_s18 = scalar_lea.vmem %s2414_s5, %s2040_s30  ;;  %379 = vst [vmem:[#allocation2 + $0x18] sm:$0xff] (%p351_p0), %v363_v3  }
  0x20   : > { %381 = vst [vmem:[#allocation2 + $0x20] sm:$0xff] (%p351_p0), %v365_v4  }
  0x21   : > { %383 = vst [vmem:[#allocation2 + $0x28] sm:$0xff] (%p351_p0), %v367_v5  }
  0x22   : > { %385 = vst [vmem:[#allocation2 + $0x30] sm:$0xff] %v369_v6  }
  0x23   : > { %387 = vst [vmem:[#allocation2 + $0x38] sm:$0xff] %v371_v7  }
  0x24 PF: > { %v1932_v9 = vmov 0.0   ;;  %v1689_v17 = vld [vmem:[%s2409_s0] sm:$0xff]  ;;  %v1695_v18 = vld [vmem:[%s2409_s0 + $0x30] sm:$0xff]  ;;  %v1690_v19 = vld [vmem:[%s2409_s0 + $0x8] sm:$0xff]  ;;  %p1664_p1 = scmp.ge.s32.totalorder %s1920_s24, 2 }
  0x25   : > { %392 = vst [vmem:[#allocation4] sm:$0x1] %v1932_v9  ;;  %v1673_v16 = vld [vmem:[#allocation2] sm:$0xff]  ;;  %v1696_v20 = vld [vmem:[%s2409_s0 + $0x38] sm:$0xff]  ;;  %v1691_v21 = vld [vmem:[%s2409_s0 + $0x10] sm:$0xff] }
  0x26   : > { %393 = vst [vmem:[#allocation5] sm:$0x1] %v1932_v9  ;;  %v1674_v15 = vld [vmem:[#allocation2 + $0x8] sm:$0xff]  ;;  %v1692_v22 = vld [vmem:[%s2409_s0 + $0x18] sm:$0xff]  ;;  %v1693_v31 = vld [vmem:[%s2409_s0 + $0x20] sm:$0xff] }
  0x27   : > { %v1675_v14 = vld [vmem:[#allocation2 + $0x10] sm:$0xff]  ;;  %v1704_v23 = vld [vmem:[%s2029_s11 + $0x38] sm:$0xff]  ;;  %v1701_v29 = vld [vmem:[%s2029_s11 + $0x20] sm:$0xff] }
  0x28   : > { %v1676_v13 = vld [vmem:[#allocation2 + $0x18] sm:$0xff]  ;;  %826 = vmatpush.bf16.msra.mxu2 %v1704_v23  ;;  %v1702_v27 = vld [vmem:[%s2029_s11 + $0x28] sm:$0xff]  ;;  %v1709_v30 = vld [vmem:[%s2029_s11 + $0x60] sm:$0xff] }
  0x29   : > { %v1677_v12 = vld [vmem:[#allocation2 + $0x20] sm:$0xff]  ;;  %v1703_v25 = vld [vmem:[%s2029_s11 + $0x30] sm:$0xff]  ;;  %v1710_v28 = vld [vmem:[%s2029_s11 + $0x68] sm:$0xff] }
  0x2a   : > { %v1680_v8 = vld [vmem:[#allocation2 + $0x38] sm:$0xff]  ;;  %v1678_v11 = vld [vmem:[#allocation2 + $0x28] sm:$0xff]  ;;  %v1681_v38 = vld [vmem:[#allocation2] sm:$0xff] }
  0x2b   : > { %543 = vmatpush.bf16.msra.mxu0 %v1680_v8  ;;  %1761 = vmatpush.bf16.msra.mxu3 %v1680_v8  ;;  %v1679_v10 = vld [vmem:[#allocation2 + $0x30] sm:$0xff]  ;;  %v1712_v24 = vld [vmem:[%s2029_s11 + $0x78] sm:$0xff]  ;;  %v1697_v36 = vld [vmem:[%s2029_s11] sm:$0xff] }
  0x2c   : > { %681 = vmatpush.bf16.msra.mxu1 %v1712_v24  ;;  %v1711_v26 = vld [vmem:[%s2029_s11 + $0x70] sm:$0xff]  ;;  %827 = vmatpush.bf16.msra.mxu2 %v1703_v25  ;;  %v1700_v32 = vld [vmem:[%s2029_s11 + $0x18] sm:$0xff]  ;;  %v1698_v35 = vld [vmem:[%s2029_s11 + $0x8] sm:$0xff] }
  0x2d   : > { %v1708_v33 = vld [vmem:[%s2029_s11 + $0x58] sm:$0xff]  ;;  %v1699_v34 = vld [vmem:[%s2029_s11 + $0x10] sm:$0xff]  ;;  %v1694_v37 = vld [vmem:[%s2409_s0 + $0x28] sm:$0xff] }
  0x2e   : > { %v1707_v39 = vld [vmem:[%s2029_s11 + $0x50] sm:$0xff]  ;;  %v1706_v40 = vld [vmem:[%s2029_s11 + $0x48] sm:$0xff]  ;;  %v1705_v41 = vld [vmem:[%s2029_s11 + $0x40] sm:$0xff] }
  0x2f   : > { %544 = vmatpush.bf16.msra.mxu0 %v1679_v10  ;;  %1762 = vmatpush.bf16.msra.mxu3 %v1679_v10  ;;  %v1682_v42 = vld [vmem:[#allocation2 + $0x8] sm:$0xff]  ;;  %v1683_v43 = vld [vmem:[#allocation2 + $0x10] sm:$0xff]  ;;  %v1684_v48 = vld [vmem:[#allocation2 + $0x18] sm:$0xff] }
  0x30   : > { %682 = vmatpush.bf16.msra.mxu1 %v1711_v26  ;;  %828 = vmatpush.bf16.msra.mxu2 %v1702_v27  ;;  %v1685_v55 = vld [vmem:[#allocation2 + $0x20] sm:$0xff]  ;;  %v1686_v61 = vld [vmem:[#allocation2 + $0x28] sm:$0xff]  ;;  %v1687_v62 = vld [vmem:[#allocation2 + $0x30] sm:$0xff] }
  0x31   : > { %v1688_v2 = vld [vmem:[#allocation2 + $0x38] sm:$0xff] }
  0x33   : > { %545 = vmatpush.bf16.msra.mxu0 %v1678_v11  ;;  %1763 = vmatpush.bf16.msra.mxu3 %v1678_v11 }
  0x34   : > { %683 = vmatpush.bf16.msra.mxu1 %v1710_v28  ;;  %829 = vmatpush.bf16.msra.mxu2 %v1701_v29 }
  0x37   : > { %546 = vmatpush.bf16.msra.mxu0 %v1677_v12  ;;  %1764 = vmatpush.bf16.msra.mxu3 %v1677_v12  ;;  %v1843_v12 = vld [vmem:[%s338_s13] ss:$0 sm:$0xff] }
  0x38   : > { %684 = vmatpush.bf16.msra.mxu1 %v1709_v30  ;;  %830 = vmatpush.bf16.msra.mxu2 %v1700_v32 }
  0x3b   : > { %547 = vmatpush.bf16.msra.mxu0 %v1676_v13  ;;  %1765 = vmatpush.bf16.msra.mxu3 %v1676_v13 }
  0x3c   : > { %685 = vmatpush.bf16.msra.mxu1 %v1708_v33  ;;  %831 = vmatpush.bf16.msra.mxu2 %v1699_v34 }
  0x3f   : > { %548 = vmatpush.bf16.msra.mxu0 %v1675_v14  ;;  %1766 = vmatpush.bf16.msra.mxu3 %v1675_v14 }
  0x40   : > { %832 = vmatpush.bf16.msra.mxu2 %v1698_v35  ;;  %686 = vmatpush.bf16.msra.mxu1 %v1707_v39 }
  0x43   : > { %549 = vmatpush.bf16.msra.mxu0 %v1674_v15  ;;  %1767 = vmatpush.bf16.msra.mxu3 %v1674_v15 }
  0x44   : > { %833 = vmatpush.bf16.msra.mxu2 %v1697_v36  ;;  %687 = vmatpush.bf16.msra.mxu1 %v1706_v40 }
  0x47   : > { %550 = vmatpush.bf16.msra.mxu0 %v1673_v16  ;;  %1768 = vmatpush.bf16.msra.mxu3 %v1673_v16 }
  0x48   : > { %834 = vmatmul.bf16.vlgmr.msra.gmra.mxu2 %v1681_v38  ;;  %688 = vmatpush.bf16.msra.mxu1 %v1705_v41 }
  0x4a   : > { %551 = vmatmul.bf16.vlgmr.msra.gmra.mxu0 %v1689_v17  ;;  %581 = vmatmul.bf16.vlgmr.msra.gmra.mxu3 %v1695_v18 }
  0x4b   : > { %1769 = vmatpush.bf16.msrb.mxu3 %v1712_v24 }
  0x4f   : > { %1770 = vmatpush.bf16.msrb.mxu3 %v1711_v26 }
  0x53   : > { %1771 = vmatpush.bf16.msrb.mxu3 %v1710_v28 }
  0x57   : > { %1772 = vmatpush.bf16.msrb.mxu3 %v1709_v30 }
  0x58   : > { %839 = vmatmul.bf16.gmra.mxu2 %v1682_v42 }
  0x5a   : > { %556 = vmatmul.bf16.gmra.mxu0 %v1690_v19  ;;  %586 = vmatmul.bf16.gmra.mxu3 %v1696_v20 }
  0x5b   : > { %1773 = vmatpush.bf16.msrb.mxu3 %v1708_v33 }
  0x5f   : > { %1774 = vmatpush.bf16.msrb.mxu3 %v1707_v39 }
  0x63   : > { %1775 = vmatpush.bf16.msrb.mxu3 %v1706_v40 }
  0x67   : > { %1776 = vmatpush.bf16.msrb.mxu3 %v1705_v41 }
  0x68   : > { %844 = vmatmul.bf16.gmra.mxu2 %v1683_v43 }
  0x6a   : > { %561 = vmatmul.bf16.gmra.mxu0 %v1691_v21 }
  0x6b   : > { %1777 = vmatpush.bf16.msra.mxu3 %v1704_v23 }
  0x6f   : > { %1778 = vmatpush.bf16.msra.mxu3 %v1703_v25 }
  0x73   : > { %1779 = vmatpush.bf16.msra.mxu3 %v1702_v27 }
  0x77   : > { %1780 = vmatpush.bf16.msra.mxu3 %v1701_v29 }
  0x78   : > { %849 = vmatmul.bf16.gmra.mxu2 %v1684_v48 }
  0x7a   : > { %566 = vmatmul.bf16.gmra.mxu0 %v1692_v22 }
  0x7b   : > { %1781 = vmatpush.bf16.msra.mxu3 %v1700_v32 }
  0x7f   : > { %1782 = vmatpush.bf16.msra.mxu3 %v1699_v34 }
  0x83   : > { %1783 = vmatpush.bf16.msra.mxu3 %v1698_v35 }
  0x87   : > { %1784 = vmatpush.bf16.msra.mxu3 %v1697_v36 }
  0x88   : > { %854 = vmatmul.bf16.gmra.mxu2 %v1685_v55 }
  0x8a   : > { %571 = vmatmul.bf16.gmra.mxu0 %v1693_v31 }
  0x98   : > { %859 = vmatmul.bf16.gmra.mxu2 %v1686_v61 }
  0x9a   : > { %576 = vmatmul.bf16.gmra.mxu0 %v1694_v37 }
  0xc7   : > { %v552_v44 = vpop.f32.mrf.mxu0 }
  0xcb   : > { %v835_v9 = vpop.f32.mrf.mxu2 }
  0xcd   : > { %v582_v45 = vpop.f32.mrf.mxu3 }
  0xcf   : > { %v554_v46 = vpop.f32.mrf.mxu0 }
  0xd0   : > { %v608_v47 = vpack.c.bf16 %v554_v46, %v552_v44 }
  0xd2   : > { %689 = vmatmul.bf16.vlgmr.msra.gmra.mxu1 %v608_v47 }
  0xd3   : > { %v837_v10 = vpop.f32.mrf.mxu2 }
  0xd5   : > { %v584_v49 = vpop.f32.mrf.mxu3 }
  0xd6   : > { %v614_v50 = vpack.c.bf16 %v584_v49, %v582_v45 }
  0xd7   : > { %v557_v51 = vpop.f32.mrf.mxu0 }
  0xd8   : > { %719 = vmatmul.bf16.vlgmr.msrb.gmra.mxu3 %v614_v50 }
  0xdb   : > { %v840_v11 = vpop.f32.mrf.mxu2 }
  0xdd   : > { %v587_v52 = vpop.f32.mrf.mxu3 }
  0xdf   : > { %v559_v53 = vpop.f32.mrf.mxu0 }
  0xe0   : > { %v609_v54 = vpack.c.bf16 %v559_v53, %v557_v51 }
  0xe2   : > { %694 = vmatmul.bf16.gmra.mxu1 %v609_v54 }
  0xe3   : > { %v842_v17 = vpop.f32.mrf.mxu2 }
  0xe5   : > { %v589_v56 = vpop.f32.mrf.mxu3 }
  0xe6   : > { %v615_v57 = vpack.c.bf16 %v589_v56, %v587_v52 }
  0xe7   : > { %v562_v58 = vpop.f32.mrf.mxu0 }
  0xe8   : > { %724 = vmatmul.bf16.gmra.mxu3 %v615_v57 }
  0xeb   : > { %v845_v23 = vpop.f32.mrf.mxu2 }
  0xef   : > { %v564_v59 = vpop.f32.mrf.mxu0 }
  0xf0   : > { %v610_v60 = vpack.c.bf16 %v564_v59, %v562_v58 }
  0xf2   : > { %699 = vmatmul.bf16.gmra.mxu1 %v610_v60 }
  0xf3   : > { %v847_v30 = vpop.f32.mrf.mxu2 }
  0xf7   : > { %v567_v63 = vpop.f32.mrf.mxu0 }
  0xf8   : > { %864 = vmatmul.bf16.vlgmr.msra.gmra.mxu3 %v1687_v62 }
  0xfb   : > { %v850_v35 = vpop.f32.mrf.mxu2 }
  0xff   : > { %v569_v0 = vpop.f32.mrf.mxu0 }
 0x100   : > { %v611_v1 = vpack.c.bf16 %v569_v0, %v567_v63 }
 0x102   : > { %704 = vmatmul.bf16.gmra.mxu1 %v611_v1 }
 0x103   : > { %v852_v43 = vpop.f32.mrf.mxu2 }
 0x107   : > { %v572_v3 = vpop.f32.mrf.mxu0 }
 0x108   : > { %869 = vmatmul.bf16.gmra.mxu3 %v1688_v2 }
 0x10b   : > { %v855_v51 = vpop.f32.mrf.mxu2 }
 0x10f   : > { %v574_v4 = vpop.f32.mrf.mxu0 }
 0x110   : > { %v612_v5 = vpack.c.bf16 %v574_v4, %v572_v3 }
 0x112   : > { %709 = vmatmul.bf16.gmra.mxu1 %v612_v5 }
 0x113   : > { %v857_v59 = vpop.f32.mrf.mxu2 }
 0x117   : > { %v577_v6 = vpop.f32.mrf.mxu0 }
 0x11b   : > { %v860_v2 = vpop.f32.mrf.mxu2 }
 0x11f   : > { %v579_v7 = vpop.f32.mrf.mxu0 }
 0x120   : > { %v613_v8 = vpack.c.bf16 %v579_v7, %v577_v6 }
 0x122   : > { %714 = vmatmul.bf16.gmra.mxu1 %v613_v8 }
 0x123   : > { %v862_v6 = vpop.f32.mrf.mxu2 }
 0x14f   : > { %v690_v13 = vpop.f32.mrf.mxu1 }
 0x150   : > { %v836_v14 = vadd.f32 %v835_v9, %v690_v13 }
 0x152   : > { %v2123_v15 = vadd.f32 %v1843_v12, %v836_v14 }
 0x157   : > { %v692_v16 = vpop.f32.mrf.mxu1 }
 0x158   : > { %v838_v18 = vadd.f32 %v837_v10, %v692_v16 }
 0x15a   : > { %v2125_v19 = vadd.f32 %v1843_v12, %v838_v18 }
 0x15b   : > { %v720_v20 = vpop.f32.mrf.mxu3 }
 0x15f   : > { %v695_v21 = vpop.f32.mrf.mxu1 }
 0x160   : > { %v841_v22 = vadd.f32 %v840_v11, %v695_v21 }
 0x162   : > { %v2127_v24 = vadd.f32 %v1843_v12, %v841_v22 }
 0x163   : > { %v722_v25 = vpop.f32.mrf.mxu3 }
 0x167   : > { %v697_v26 = vpop.f32.mrf.mxu1 }
 0x168   : > { %v843_v27 = vadd.f32 %v842_v17, %v697_v26 }
 0x16a   : > { %v2129_v28 = vadd.f32 %v1843_v12, %v843_v27 }
 0x16b   : > { %v725_v29 = vpop.f32.mrf.mxu3 }
 0x16f   : > { %v700_v31 = vpop.f32.mrf.mxu1 }
 0x170   : > { %v846_v32 = vadd.f32 %v845_v23, %v700_v31 }
 0x172   : > { %v2131_v33 = vadd.f32 %v1843_v12, %v846_v32 }
 0x173   : > { %v727_v34 = vpop.f32.mrf.mxu3 }
 0x177   : > { %v702_v36 = vpop.f32.mrf.mxu1 }
 0x178   : > { %v848_v37 = vadd.f32 %v847_v30, %v702_v36 }
 0x17a   : > { %v2133_v38 = vadd.f32 %v1843_v12, %v848_v37 }
 0x17b   : > { %v865_v39 = vpop.f32.mrf.mxu3 }
 0x17c   : > { %v866_v40 = vadd.f32 %v865_v39, %v720_v20 }
 0x17e   : > { %v2135_v41 = vadd.f32 %v1843_v12, %v866_v40 }
 0x17f   : > { %v705_v42 = vpop.f32.mrf.mxu1 }
 0x180   : > { %v851_v44 = vadd.f32 %v850_v35, %v705_v42 }
 0x182   : > { %v2137_v45 = vadd.f32 %v1843_v12, %v851_v44 }
 0x183   : > { %v867_v46 = vpop.f32.mrf.mxu3 }
 0x184   : > { %v868_v47 = vadd.f32 %v867_v46, %v722_v25 }
 0x186   : > { %v2139_v48 = vadd.f32 %v1843_v12, %v868_v47 }
 0x187   : > { %v707_v49 = vpop.f32.mrf.mxu1 }
 0x188   : > { %v853_v50 = vadd.f32 %v852_v43, %v707_v49 }
 0x18a   : > { %v2141_v52 = vadd.f32 %v1843_v12, %v853_v50 }
 0x18b   : > { %v870_v53 = vpop.f32.mrf.mxu3 }
 0x18c   : > { %v871_v54 = vadd.f32 %v870_v53, %v725_v29 }
 0x18e   : > { %v2143_v55 = vadd.f32 %v1843_v12, %v871_v54 }
 0x18f   : > { %v710_v56 = vpop.f32.mrf.mxu1 }
 0x190   : > { %v856_v57 = vadd.f32 %v855_v51, %v710_v56 }
 0x192   : > { %v2145_v58 = vadd.f32 %v1843_v12, %v856_v57 }
 0x193   : > { %v872_v60 = vpop.f32.mrf.mxu3 }
 0x194   : > { %v873_v61 = vadd.f32 %v872_v60, %v727_v34 }
 0x196   : > { %v2147_v62 = vadd.f32 %v1843_v12, %v873_v61 }
 0x197   : > { %v712_v63 = vpop.f32.mrf.mxu1 }
 0x198   : > { %v858_v0 = vadd.f32 %v857_v59, %v712_v63 }
 0x19a   : > { %v2149_v1 = vadd.f32 %v1843_v12, %v858_v0 }
 0x19f   : > { %v715_v3 = vpop.f32.mrf.mxu1 }
 0x1a0   : > { %v861_v4 = vadd.f32 %v860_v2, %v715_v3 }
 0x1a2   : > { %v2151_v5 = vadd.f32 %v1843_v12, %v861_v4 }
 0x1a6   : > { %898 = sbr.rel (%p1664_p1) target bundleno = 475 (0x1db), region = 60 }
 0x1a7   : > { %v717_v7 = vpop.f32.mrf.mxu1 }
 0x1a8   : > { %v863_v8 = vadd.f32 %v862_v6, %v717_v7 }
 0x1aa   : > { %v2153_v9 = vadd.f32 %v1843_v12, %v863_v8 }
 0x1ab   : > { %1062 = vst [vmem:[#allocation3 + $0x30] sm:$0xff] %v2123_v15  ;;  %v983_v10 = vmul.f32 0.0, %v2127_v24  ;;  %v998_v11 = vadd.f32 %v2125_v19, %v2123_v15  ;;  %v984_v13 = vmul.f32 0.0, %v2129_v28  ;;  %v1022_v12 = vmul.f32 %v2123_v15, %v2123_v15 }
 0x1ac   : > { %1063 = vst [vmem:[#allocation3] sm:$0xff] %v2125_v19  ;;  %v1023_v14 = vmul.f32 %v2125_v19, %v2125_v19  ;;  %v985_v17 = vmul.f32 0.0, %v2131_v33  ;;  %v986_v21 = vmul.f32 0.0, %v2133_v38  ;;  %v987_v26 = vmul.f32 0.0, %v2137_v45 }
 0x1ad   : > { %1064 = vst [vmem:[#allocation3 + $0x58] sm:$0xff] %v2127_v24  ;;  %v999_v16 = vadd.f32 %v998_v11, %v983_v10  ;;  %v1024_v18 = vmul.f32 %v983_v10, %v2127_v24  ;;  %v1025_v22 = vmul.f32 %v984_v13, %v2129_v28  ;;  %v988_v31 = vmul.f32 0.0, %v2141_v52 }
 0x1ae   : > { %1065 = vst [vmem:[#allocation3 + $0x18] sm:$0xff] %v2129_v28  ;;  %v1038_v23 = vadd.f32 %v1023_v14, %v1022_v12  ;;  %v1026_v27 = vmul.f32 %v985_v17, %v2131_v33  ;;  %v1027_v32 = vmul.f32 %v986_v21, %v2133_v38  ;;  %v989_v36 = vmul.f32 0.0, %v2145_v58 }
 0x1af   : > { %1066 = vst [vmem:[#allocation3 + $0x50] sm:$0xff] %v2131_v33  ;;  %v1000_v20 = vadd.f32 %v999_v16, %v984_v13  ;;  %v1028_v37 = vmul.f32 %v987_v26, %v2137_v45  ;;  %v990_v42 = vmul.f32 0.0, %v2149_v1  ;;  %v1029_v43 = vmul.f32 %v988_v31, %v2141_v52 }
 0x1b0   : > { %1067 = vst [vmem:[#allocation3 + $0x68] sm:$0xff] %v2133_v38  ;;  %v1039_v29 = vadd.f32 %v1038_v23, %v1024_v18  ;;  %v991_v47 = vmul.f32 0.0, %v2151_v5  ;;  %v1030_v49 = vmul.f32 %v989_v36, %v2145_v58  ;;  %v992_v53 = vmul.f32 0.0, %v2153_v9 }
 0x1b1   : > { %1068 = vst [vmem:[#allocation3 + $0x8] sm:$0xff] %v2137_v45  ;;  %v1001_v25 = vadd.f32 %v1000_v20, %v985_v17  ;;  %v1031_v54 = vmul.f32 %v990_v42, %v2149_v1  ;;  %v993_v59 = vmul.f32 0.0, %v2135_v41  ;;  %v994_v0 = vmul.f32 0.0, %v2139_v48 }
 0x1b2   : > { %1069 = vst [vmem:[#allocation3 + $0x48] sm:$0xff] %v2141_v52  ;;  %v1040_v34 = vadd.f32 %v1039_v29, %v1025_v22  ;;  %v1032_v60 = vmul.f32 %v991_v47, %v2151_v5  ;;  %v1033_v2 = vmul.f32 %v992_v53, %v2153_v9  ;;  %v995_v6 = vmul.f32 0.0, %v2143_v55 }
 0x1b3   : > { %1070 = vst [vmem:[#allocation3 + $0x40] sm:$0xff] %v2145_v58  ;;  %v1002_v30 = vadd.f32 %v1001_v25, %v986_v21  ;;  %v1034_v7 = vmul.f32 %v993_v59, %v2135_v41  ;;  %v996_v11 = vmul.f32 0.0, %v2147_v62  ;;  %v1035_v13 = vmul.f32 %v994_v0, %v2139_v48 }
 0x1b4   : > { %1071 = vst [vmem:[#allocation3 + $0x20] sm:$0xff] %v2149_v1  ;;  %v1041_v39 = vadd.f32 %v1040_v34, %v1026_v27  ;;  %v1036_v16 = vmul.f32 %v995_v6, %v2143_v55  ;;  %v997_v34 = vld [vmem:[#allocation4] sm:$0x1] }
 0x1b5   : > { %1072 = vst [vmem:[#allocation3 + $0x10] sm:$0xff] %v2151_v5  ;;  %v1003_v35 = vadd.f32 %v1002_v30, %v987_v26  ;;  %v1037_v20 = vmul.f32 %v996_v11, %v2147_v62 }
 0x1b6   : > { %1073 = vst [vmem:[#allocation3 + $0x38] sm:$0xff] %v2153_v9  ;;  %v1042_v44 = vadd.f32 %v1041_v39, %v1027_v32 }
 0x1b7   : > { %1074 = vst [vmem:[#allocation3 + $0x60] sm:$0xff] %v2135_v41  ;;  %v1004_v40 = vadd.f32 %v1003_v35, %v988_v31 }
 0x1b8   : > { %1075 = vst [vmem:[#allocation3 + $0x70] sm:$0xff] %v2139_v48  ;;  %v1043_v50 = vadd.f32 %v1042_v44, %v1028_v37 }
 0x1b9   : > { %1076 = vst [vmem:[#allocation3 + $0x78] sm:$0xff] %v2143_v55  ;;  %v1005_v46 = vadd.f32 %v1004_v40, %v989_v36 }
 0x1ba   : > { %1077 = vst [vmem:[#allocation3 + $0x28] sm:$0xff] %v2147_v62  ;;  %v1044_v56 = vadd.f32 %v1043_v50, %v1029_v43 }
 0x1bb   : > { %v1006_v51 = vadd.f32 %v1005_v46, %v990_v42  ;;  %v1021_v42 = vld [vmem:[#allocation5] sm:$0x1] }
 0x1bc   : > { %v1045_v61 = vadd.f32 %v1044_v56, %v1030_v49 }
 0x1bd   : > { %v1007_v57 = vadd.f32 %v1006_v51, %v991_v47 }
 0x1be   : > { %v1046_v3 = vadd.f32 %v1045_v61, %v1031_v54 }
 0x1bf   : > { %v1008_v63 = vadd.f32 %v1007_v57, %v992_v53 }
 0x1c0   : > { %v1047_v8 = vadd.f32 %v1046_v3, %v1032_v60 }
 0x1c1   : > { %v1009_v4 = vadd.f32 %v1008_v63, %v993_v59 }
 0x1c2   : > { %v1048_v12 = vadd.f32 %v1047_v8, %v1033_v2 }
 0x1c3   : > { %v1010_v10 = vadd.f32 %v1009_v4, %v994_v0 }
 0x1c4   : > { %v1049_v17 = vadd.f32 %v1048_v12, %v1034_v7 }
 0x1c5   : > { %v1011_v14 = vadd.f32 %v1010_v10, %v995_v6 }
 0x1c6   : > { %v1050_v21 = vadd.f32 %v1049_v17, %v1035_v13 }
 0x1c7   : > { %v1012_v18 = vadd.f32 %v1011_v14, %v996_v11 }
 0x1c8   : > { %v1051_v23 = vadd.f32 %v1050_v21, %v1036_v16 }
 0x1c9   : > { %v1013_v22 = vrot.slane %v1012_v18, 4 }
 0x1ca   : > { %v1052_v26 = vadd.f32 %v1051_v23, %v1037_v20 }
 0x1cb   : > { %v1014_v25 = vadd.f32 %v1013_v22, %v1012_v18 }
 0x1cc   : > { %v1053_v29 = vrot.slane %v1052_v26, 4 }
 0x1cd   : > { %v1015_v27 = vrot.slane %v1014_v25, 2 }
 0x1ce   : > { %v1054_v31 = vadd.f32 %v1053_v29, %v1052_v26 }
 0x1cf   : > { %v1016_v30 = vadd.f32 %v1015_v27, %v1014_v25 }
 0x1d0   : > { %v1055_v35 = vrot.slane %v1054_v31, 2 }
 0x1d1   : > { %v1017_v32 = vrot.slane %v1016_v30, 1 }
 0x1d2   : > { %v1056_v37 = vadd.f32 %v1055_v35, %v1054_v31 }
 0x1d3   : > { %v1018_v36 = vadd.f32 %v1017_v32, %v1016_v30 }
 0x1d4   : > { %v1057_v40 = vrot.slane %v1056_v37, 1 }
 0x1d5   : > { %v1019_v39 = vadd.f32 %v1018_v36, %v997_v34 }
 0x1d6   : > { %v1058_v43 = vadd.f32 %v1057_v40, %v1056_v37 }
 0x1d7   : > { %1020 = vst [vmem:[#allocation4] sm:$0x1] %v1019_v39 }
 0x1d8   : > { %v1059_v44 = vadd.f32 %v1058_v43, %v1021_v42 }
 0x1da   : > { %1060 = vst [vmem:[#allocation5] sm:$0x1] %v1059_v44 }
 0x1db PF: > { %p1665_p2 = scmp.ne.s32.totalorder %s1920_s24, 2 }
 0x1dd   : > { %1081 = sbr.rel (%p1665_p2) target bundleno = 498 (0x1f2), region = 64 }
 0x1e2   : > { %1082 = vst [vmem:[%s2415_s6] sm:$0xff] %v2123_v15 }
 0x1e3   : > { %1083 = vst [vmem:[%s2415_s6 + $0x8] sm:$0xff] %v2125_v19 }
 0x1e4   : > { %1084 = vst [vmem:[%s2415_s6 + $0x10] sm:$0xff] %v2127_v24 }
 0x1e5   : > { %1085 = vst [vmem:[%s2415_s6 + $0x18] sm:$0xff] %v2129_v28 }
 0x1e6   : > { %1086 = vst [vmem:[%s2415_s6 + $0x20] sm:$0xff] %v2131_v33 }
 0x1e7   : > { %1087 = vst [vmem:[%s2415_s6 + $0x28] sm:$0xff] %v2133_v38 }
 0x1e8   : > { %1088 = vst [vmem:[%s2415_s6 + $0x30] sm:$0xff] %v2137_v45 }
 0x1e9   : > { %1089 = vst [vmem:[%s2415_s6 + $0x38] sm:$0xff] %v2141_v52 }
 0x1ea   : > { %1090 = vst [vmem:[%s2415_s6 + $0x40] sm:$0xff] %v2145_v58 }
 0x1eb   : > { %1091 = vst [vmem:[%s2415_s6 + $0x48] sm:$0xff] %v2149_v1 }
 0x1ec   : > { %1092 = vst [vmem:[%s2415_s6 + $0x50] sm:$0xff] %v2151_v5 }
 0x1ed   : > { %1093 = vst [vmem:[%s2415_s6 + $0x58] sm:$0xff] %v2153_v9 }
 0x1ee   : > { %1094 = vst [vmem:[%s2415_s6 + $0x60] sm:$0xff] %v2135_v41 }
 0x1ef   : > { %1095 = vst [vmem:[%s2415_s6 + $0x68] sm:$0xff] %v2139_v48 }
 0x1f0   : > { %1096 = vst [vmem:[%s2415_s6 + $0x70] sm:$0xff] %v2143_v55 }
 0x1f1   : > { %1097 = vst [vmem:[%s2415_s6 + $0x78] sm:$0xff] %v2147_v62 }
 0x1f2 PF: > { %1101 = sbr.rel (!%p336_p13) target bundleno = 561 (0x231), region = 68  ;;  %v1102_v15 = vld [vmem:[#allocation4] sm:$0x1] (%p336_p13)  ;;  %v1104_v19 = vld [vmem:[#allocation5] sm:$0x1] (%p336_p13)  ;;  %v1120_v62 = vld [vmem:[#allocation3 + $0x30] sm:$0xff] (%p336_p13) }
 0x1f3   : > { %v1103_v24 = vmul.f32 (%p336_p13), 0.0625, %v1102_v15  ;;  %v1105_v28 = vmul.f32 (%p336_p13), 0.0625, %v1104_v19  ;;  %v1121_v1 = vld [vmem:[#allocation3] sm:$0xff] (%p336_p13)  ;;  %v1122_v9 = vld [vmem:[#allocation3 + $0x58] sm:$0xff] (%p336_p13)  ;;  %v1124_v47 = vld [vmem:[#allocation3 + $0x50] sm:$0xff] (%p336_p13) }
 0x1f4   : > { %v1123_v46 = vld [vmem:[#allocation3 + $0x18] sm:$0xff] (%p336_p13)  ;;  %v1125_v50 = vld [vmem:[#allocation3 + $0x68] sm:$0xff] (%p336_p13)  ;;  %v1128_v56 = vld [vmem:[#allocation3 + $0x40] sm:$0xff] (%p336_p13) }
 0x1f5   : > { %v1106_v33 = vmul.f32 (%p336_p13), %v1103_v24, %v1103_v24  ;;  %v2273_v5 = vperm.slane (%p336_p13), %v1103_v24, 0  ;;  %v1126_v51 = vld [vmem:[#allocation3 + $0x8] sm:$0xff] (%p336_p13)  ;;  %v1129_v57 = vld [vmem:[#allocation3 + $0x20] sm:$0xff] (%p336_p13)  ;;  %v2281_v63 = vld [vmem:[#allocation3 + $0x10] sm:$0xff] (%p336_p13) }
 0x1f6   : > { %v1127_v53 = vld [vmem:[#allocation3 + $0x48] sm:$0xff] (%p336_p13)  ;;  %v2283_v0 = vld [vmem:[#allocation3 + $0x38] sm:$0xff] (%p336_p13)  ;;  %v2285_v2 = vld [vmem:[#allocation3 + $0x60] sm:$0xff] (%p336_p13) }
 0x1f7   : > { %v1107_v38 = vsub.f32 %v1105_v28, %v1106_v33  ;;  %v1139_v60 = vsub.f32 %v1120_v62, %v2273_v5  ;;  %v1140_v61 = vsub.f32 %v1121_v1, %v2273_v5  ;;  %v1141_v3 = vsub.f32 %v1122_v9, %v2273_v5  ;;  %v2291_v8 = vld [vmem:[#allocation3 + $0x70] sm:$0xff]  ;;  %v2293_v10 = vld [vmem:[#allocation3 + $0x78] sm:$0xff]  ;;  %v2295_v11 = vld [vmem:[#allocation3 + $0x28] sm:$0xff] }
 0x1f8   : > { %v1142_v4 = vsub.f32 %v1123_v46, %v2273_v5  ;;  %v1143_v6 = vsub.f32 %v1124_v47, %v2273_v5  ;;  %v1144_v7 = vsub.f32 %v1125_v50, %v2273_v5  ;;  %v1145_v12 = vsub.f32 %v1126_v51, %v2273_v5  ;;  %v2309_v18 = vld [vmem:[%s341_s8] ss:$0 sm:$0xff] }
 0x1f9   : > { %v1108_v41 = vmax.f32 %v1107_v38, 0.0  ;;  %v1146_v14 = vsub.f32 %v1127_v53, %v2273_v5  ;;  %v1147_v16 = vsub.f32 %v1128_v56, %v2273_v5  ;;  %v1148_v20 = vsub.f32 %v1129_v57, %v2273_v5  ;;  %v2331_v31 = vld [vmem:[%s344_s18] ss:$0 sm:$0xff] }
 0x1fa   : > { %v1149_v21 = vsub.f32 %v2281_v63, %v2273_v5  ;;  %v1150_v22 = vsub.f32 %v2283_v0, %v2273_v5  ;;  %v1151_v23 = vsub.f32 %v2285_v2, %v2273_v5  ;;  %v1152_v25 = vsub.f32 %v2291_v8, %v2273_v5 }
 0x1fb   : > { %v1109_v45 = vadd.f32 1e-05, %v1108_v41  ;;  %v1153_v26 = vsub.f32 %v2293_v10, %v2273_v5  ;;  %v1154_v27 = vsub.f32 %v2295_v11, %v2273_v5 }
 0x1fd   : > { %1846 = vrsqrt.f32 %v1109_v45  ;;  %vm1116_vm0 = vweird.f32 %v1109_v45 }
 0x203   : > { %v1847_v48 = vpop.eup %1846 }
 0x204   : > { %v1111_v52 = vmul.f32 %v1847_v48, %v1109_v45  ;;  %vm1117_vm1 = vweird.f32 %v1847_v48 }
 0x205   : > { %vm2275_vm2 = vmor %vm1116_vm0, %vm1117_vm1 }
 0x206   : > { %v1112_v55 = vmul.f32 %v1847_v48, %v1111_v52 }
 0x208   : > { %v1113_v58 = vmul.f32 0.5, %v1112_v55 }
 0x20a   : > { %v1114_v49 = vsub.f32 1.5, %v1113_v58 }
 0x20c   : > { %v1115_v59 = vmul.f32 %v1847_v48, %v1114_v49 }
 0x20e   : > { %v1119_v13 = vsel %vm2275_vm2, %v1847_v48, %v1115_v59 }
 0x20f   : > { %v2302_v17 = vperm.slane %v1119_v13, 0 }
 0x211   : > { %v1158_v29 = vmul.f32 %v2302_v17, %v1139_v60  ;;  %v1159_v30 = vmul.f32 %v2302_v17, %v1140_v61  ;;  %v1160_v32 = vmul.f32 %v2302_v17, %v1141_v3  ;;  %v1161_v34 = vmul.f32 %v2302_v17, %v1142_v4 }
 0x212   : > { %v1162_v35 = vmul.f32 %v2302_v17, %v1143_v6  ;;  %v1163_v36 = vmul.f32 %v2302_v17, %v1144_v7  ;;  %v1164_v37 = vmul.f32 %v2302_v17, %v1145_v12  ;;  %v1165_v39 = vmul.f32 %v2302_v17, %v1146_v14 }
 0x213   : > { %v1178_v40 = vmul.f32 %v2309_v18, %v1158_v29  ;;  %v1179_v42 = vmul.f32 %v2309_v18, %v1159_v30  ;;  %v1180_v43 = vmul.f32 %v2309_v18, %v1160_v32  ;;  %v1181_v44 = vmul.f32 %v2309_v18, %v1161_v34 }
 0x214   : > { %v1182_v15 = vmul.f32 %v2309_v18, %v1162_v35  ;;  %v1183_v19 = vmul.f32 %v2309_v18, %v1163_v36  ;;  %v1184_v24 = vmul.f32 %v2309_v18, %v1164_v37  ;;  %v1185_v28 = vmul.f32 %v2309_v18, %v1165_v39 }
 0x215   : > { %v1198_v33 = vadd.f32 %v2331_v31, %v1178_v40  ;;  %v1199_v38 = vadd.f32 %v2331_v31, %v1179_v42  ;;  %v1200_v41 = vadd.f32 %v2331_v31, %v1180_v43  ;;  %v1201_v45 = vadd.f32 %v2331_v31, %v1181_v44 }
 0x216   : > { %v1202_v48 = vadd.f32 %v2331_v31, %v1182_v15  ;;  %v1203_v52 = vadd.f32 %v2331_v31, %v1183_v19  ;;  %v1204_v55 = vadd.f32 %v2331_v31, %v1184_v24  ;;  %v1205_v58 = vadd.f32 %v2331_v31, %v1185_v28 }
 0x217   : > { %v1214_v62 = vmul.f32 0.01, %v1198_v33  ;;  %v1215_v1 = vmul.f32 0.01, %v1199_v38  ;;  %v1216_v9 = vmul.f32 0.01, %v1200_v41  ;;  %v1166_v46 = vmul.f32 %v2302_v17, %v1147_v16 }
 0x218   : > { %v1217_v47 = vmul.f32 0.01, %v1201_v45  ;;  %v1218_v49 = vmul.f32 0.01, %v1202_v48  ;;  %v1219_v50 = vmul.f32 0.01, %v1203_v52  ;;  %v1167_v51 = vmul.f32 %v2302_v17, %v1148_v20 }
 0x219   : > { %v1230_v53 = vmax.f32 %v1198_v33, %v1214_v62  ;;  %v1231_v54 = vmax.f32 %v1199_v38, %v1215_v1  ;;  %v1232_v56 = vmax.f32 %v1200_v41, %v1216_v9  ;;  %v1220_v57 = vmul.f32 0.01, %v1204_v55 }
 0x21a   : > { %v1233_v59 = vmax.f32 %v1201_v45, %v1217_v47  ;;  %v1234_v60 = vmax.f32 %v1202_v48, %v1218_v49  ;;  %v1235_v61 = vmax.f32 %v1203_v52, %v1219_v50  ;;  %v1221_v63 = vmul.f32 0.01, %v1205_v58 }
 0x21b   : > { %v1717_v0 = vpack.c.bf16 %v1231_v54, %v1230_v53  ;;  %v1313_v3 = vmul.f32 0.0, %v1232_v56  ;;  %v1236_v4 = vmax.f32 %v1204_v55, %v1220_v57  ;;  %v1186_v6 = vmul.f32 %v2309_v18, %v1166_v46 }
 0x21c   : > { %v1314_v7 = vmul.f32 0.0, %v1233_v59  ;;  %v1315_v13 = vmul.f32 0.0, %v1234_v60  ;;  %v1316_v12 = vmul.f32 0.0, %v1235_v61  ;;  %v1237_v14 = vmax.f32 %v1205_v58, %v1221_v63 }
 0x21d   : > { %1718 = vst [vmem:[#allocation2] sm:$0xff] %v1717_v0   ;;  %v1317_v16 = vmul.f32 0.0, %v1236_v4  ;;  %v1187_v20 = vmul.f32 %v2309_v18, %v1167_v51  ;;  %v1206_v29 = vadd.f32 %v2331_v31, %v1186_v6  ;;  %v1168_v30 = vmul.f32 %v2302_v17, %v1149_v21 }
 0x21e   : > { %v1722_v32 = vpack.c.bf16 %v1314_v7, %v1313_v3  ;;  %v1727_v34 = vpack.c.bf16 %v1316_v12, %v1315_v13  ;;  %v1318_v35 = vmul.f32 0.0, %v1237_v14  ;;  %v1169_v36 = vmul.f32 %v2302_v17, %v1150_v22 }
 0x21f   : > { %v1207_v37 = vadd.f32 %v2331_v31, %v1187_v20  ;;  %v1222_v39 = vmul.f32 0.01, %v1206_v29  ;;  %v1188_v40 = vmul.f32 %v2309_v18, %v1168_v30  ;;  %v1170_v42 = vmul.f32 %v2302_v17, %v1151_v23 }
 0x220   : > { %1754 = vst [vmem:[#allocation2 + $0x8] sm:$0xff] %v1722_v32   ;;  %v1732_v43 = vpack.c.bf16 %v1318_v35, %v1317_v16  ;;  %v1189_v44 = vmul.f32 %v2309_v18, %v1169_v36  ;;  %v1171_v21 = vmul.f32 %v2302_v17, %v1152_v25  ;;  %v1172_v22 = vmul.f32 %v2302_v17, %v1153_v26 }
 0x221   : > { %1755 = vst [vmem:[#allocation2 + $0x10] sm:$0xff] %v1727_v34   ;;  %v1223_v15 = vmul.f32 0.01, %v1207_v37  ;;  %v1238_v19 = vmax.f32 %v1206_v29, %v1222_v39  ;;  %v1208_v2 = vadd.f32 %v2331_v31, %v1188_v40  ;;  %v1190_v23 = vmul.f32 %v2309_v18, %v1170_v42 }
 0x222   : > { %1756 = vst [vmem:[#allocation2 + $0x18] sm:$0xff] %v1732_v43   ;;  %v1209_v24 = vadd.f32 %v2331_v31, %v1189_v44  ;;  %v1191_v28 = vmul.f32 %v2309_v18, %v1171_v21  ;;  %v1173_v8 = vmul.f32 %v2302_v17, %v1154_v27  ;;  %v1192_v10 = vmul.f32 %v2309_v18, %v1172_v22 }
 0x223   : > { %v1239_v25 = vmax.f32 %v1207_v37, %v1223_v15  ;;  %v1319_v26 = vmul.f32 0.0, %v1238_v19  ;;  %v1224_v33 = vmul.f32 0.01, %v1208_v2  ;;  %v1210_v38 = vadd.f32 %v2331_v31, %v1190_v23 }
 0x224   : > { %v1225_v41 = vmul.f32 0.01, %v1209_v24  ;;  %v1211_v45 = vadd.f32 %v2331_v31, %v1191_v28  ;;  %v1193_v48 = vmul.f32 %v2309_v18, %v1173_v8  ;;  %v1212_v52 = vadd.f32 %v2331_v31, %v1192_v10 }
 0x225   : > { %v1320_v55 = vmul.f32 0.0, %v1239_v25  ;;  %v1240_v58 = vmax.f32 %v1208_v2, %v1224_v33  ;;  %v1226_v62 = vmul.f32 0.01, %v1210_v38 }
 0x226   : > { %v1241_v5 = vmax.f32 %v1209_v24, %v1225_v41  ;;  %v1227_v11 = vmul.f32 0.01, %v1211_v45  ;;  %v1213_v17 = vadd.f32 %v2331_v31, %v1193_v48  ;;  %v1228_v27 = vmul.f32 0.01, %v1212_v52 }
 0x227   : > { %v1737_v1 = vpack.c.bf16 %v1320_v55, %v1319_v26  ;;  %v1321_v9 = vmul.f32 0.0, %v1240_v58  ;;  %v1242_v46 = vmax.f32 %v1210_v38, %v1226_v62 }
 0x228   : > { %v1322_v47 = vmul.f32 0.0, %v1241_v5  ;;  %v1243_v49 = vmax.f32 %v1211_v45, %v1227_v11  ;;  %v1229_v50 = vmul.f32 0.01, %v1213_v17  ;;  %v1244_v51 = vmax.f32 %v1212_v52, %v1228_v27 }
 0x229   : > { %1757 = vst [vmem:[#allocation2 + $0x20] sm:$0xff] %v1737_v1   ;;  %v1323_v53 = vmul.f32 0.0, %v1242_v46 }
 0x22a   : > { %v1742_v18 = vpack.c.bf16 %v1322_v47, %v1321_v9  ;;  %v1324_v54 = vmul.f32 0.0, %v1243_v49  ;;  %v1245_v56 = vmax.f32 %v1213_v17, %v1229_v50  ;;  %v1325_v57 = vmul.f32 0.0, %v1244_v51 }
 0x22c   : > { %1758 = vst [vmem:[#allocation2 + $0x28] sm:$0xff] %v1742_v18   ;;  %v1747_v59 = vpack.c.bf16 %v1324_v54, %v1323_v53  ;;  %v1326_v60 = vmul.f32 0.0, %v1245_v56 }
 0x22e   : > { %1759 = vst [vmem:[#allocation2 + $0x30] sm:$0xff] %v1747_v59   ;;  %v1752_v61 = vpack.c.bf16 %v1326_v60, %v1325_v57 }
 0x230   : > { %1760 = vst [vmem:[#allocation2 + $0x38] sm:$0xff] %v1752_v61  }
 0x231 PF: > { %s19_s26 = sadd.s32 1, %s1928_s26   ;;  %s2420_s21 = smov %s1912_s22 }
 0x232   : > { %p16_p3 = scmp.ge.s32.totalorder %s19_s26, 5   ;;  %s2421_s22 = smov %s1916_s23 }
 0x233   : > { %s2422_s23 = smov %s2017_s9  ;;  %s2423_s24 = smov %s1924_s25 }
 0x234   : > { %s2424_s25 = smov %s2426_s28  ;;  %18 = sbr.rel (!%p16_p3) target bundleno = 4 (0x4), region = 119 }
 0x239   :  { %1381 = vsyncpa [#allocation7], 1 }
 0x23a   :  { %1383 = vsyncpa [#allocation7 + $0x1], 1 }

</bundles_post_ra>
